<compile_context>
chip_gen: v7x
topology: tpu7x:2x2x1
jax: 0.10.0
libtpu: 0.0.40
codegen_flags: <defaults>
</compile_context>

<pallas_src>
import functools

import jax
import jax.numpy as jnp
import numpy as np
from jax.experimental import pallas as pl
from jax.experimental.pallas import tpu as pltpu


def _vmem_capacity_bytes():
    try:
        return int(pltpu.get_tpu_info().vmem_capacity_bytes)
    except Exception:
        return 64 << 20  # conservative: assume v7x-sized VMEM


def _loss_from_logpt(logpt, pt, gamma):
    """loss = -(1 - pt)**gamma * logpt, gamma is a static Python number."""
    g = float(gamma)
    if g == 0.0:
        return -logpt
    # pt can round slightly above 1 when logpt ~ 0; clamp so a non-integer
    # power never sees a negative base (jnp.power(neg, non-int) -> NaN).
    base = jnp.maximum(1.0 - pt, 0.0)
    if g == int(g) and 0 < g <= 64:
        e = int(g)
        w = None
        while e:                              # exponentiation by squaring
            if e & 1:
                w = base if w is None else w * base
            e >>= 1
            if e:
                base = base * base
    else:
        w = jnp.power(base, jnp.float32(g))
    return -w * logpt


# ----------------------------------------------------------------------------
# Main kernel: NCHW logits, pixels dense on (sublane, lane), classes unrolled.
# ----------------------------------------------------------------------------
def _focal_kernel(x_ref, t_ref, out_ref, acc_ref, *, gamma, c, tile_rows,
                  total_pix, mask_tail):
    so = pl.program_id(1)               # outer spatial slice ("parallel")
    si = pl.program_id(2)               # inner spatial step ("arbitrary")
    n_outer = pl.num_programs(1)
    n_inner = pl.num_programs(2)

    @pl.when(si == 0)
    def _():
        acc_ref[...] = jnp.zeros_like(acc_ref)

    t = t_ref[0]                                    # (tile_rows, 128) int32
    need_pt = float(gamma) != 0.0

    # 1) per-pixel running max over classes (full-density vregs, no XLU).
    m = x_ref[0, 0].astype(jnp.float32)
    for ci in range(1, c):
        m = jnp.maximum(m, x_ref[0, ci].astype(jnp.float32))

    # 2) sum of exp(x - m) over classes + target-class gather via selects.
    sum_exp = None
    z_t = None
    ez_t = None
    for ci in range(c):
        z = x_ref[0, ci].astype(jnp.float32) - m
        ez = jnp.exp(z)
        sum_exp = ez if sum_exp is None else sum_exp + ez
        hit = t == ci
        z_t = jnp.where(hit, z, 0.0) if z_t is None else jnp.where(hit, z, z_t)
        if need_pt:
            ez_t = (jnp.where(hit, ez, 0.0) if ez_t is None
                    else jnp.where(hit, ez, ez_t))

    logpt = z_t - jnp.log(sum_exp)
    if need_pt:
        # reuse exp(z_t) from the softmax pass; exact reciprocal (see header).
        pt = ez_t * pl.reciprocal(sum_exp)
    else:
        pt = None
    loss = _loss_from_logpt(logpt, pt, gamma)       # (tile_rows, 128)

    if mask_tail:
        last = jnp.logical_and(so == n_outer - 1, si == n_inner - 1)

        @pl.when(last)
        def _():
            # select (not arithmetic masking) so garbage/NaN lanes from the
            # padded / ragged tail are discarded.
            row0 = (so * n_inner + si) * tile_rows
            r = jax.lax.broadcasted_iota(jnp.int32, loss.shape, 0)
            l = jax.lax.broadcasted_iota(jnp.int32, loss.shape, 1)
            pix = (r + row0) * 128 + l
            acc_ref[...] += jnp.where(pix < total_pix, loss, 0.0)

        @pl.when(jnp.logical_not(last))
        def _():
            acc_ref[...] += loss
    else:
        acc_ref[...] += loss

    @pl.when(si == n_inner - 1)
    def _():
        # single cross-lane/sublane reduction per (image, outer slice)
        out_ref[...] = jnp.sum(acc_ref[...], keepdims=True)[None, None]


def _focal_sum_nchw(x3, t2, gamma):
    """Sum of focal losses for x3 (N, C, HW), t2 (N, HW) int32."""
    n, c, hw = x3.shape
    itemsize = jnp.dtype(x3.dtype).itemsize

    hw_pad = ((hw + 127) // 128) * 128
    if hw_pad != hw:
        # TODO(synk): one pad copy when H*W is not a multiple of 128; the
        # common segmentation shapes take the free-reshape path.
        x3 = jnp.pad(x3, ((0, 0), (0, 0), (0, hw_pad - hw)))
        t2 = jnp.pad(t2, ((0, 0), (0, hw_pad - hw)))
    rows = hw_pad // 128
    x4 = x3.reshape(n, c, rows, 128)                 # free view
    t3 = t2.reshape(n, rows, 128)

    vmem_cap = _vmem_capacity_bytes()
    small_vmem = vmem_cap <= (64 << 20)              # v7x
    budget = (24 << 20) if small_vmem else (40 << 20)
    limit_cap = (56 << 20) if small_vmem else (96 << 20)

    # tile sizing from a VMEM byte budget (2x pipelined x + t, 1x accumulator)
    bytes_per_row = 128 * (2 * (c * itemsize + 4) + 4)
    max_rows = min(512, max(8, (budget // bytes_per_row) // 8 * 8))
    tile_rows = rows if rows <= max_rows else max_rows

    num_blocks = pl.cdiv(rows, tile_rows)
    n_outer = 2 if (num_blocks % 2 == 0 and num_blocks >= 2) else 1
    n_inner = num_blocks // n_outer

    # mask only if there are padded lanes or a ragged last block
    mask_tail = (num_blocks * tile_rows * 128 != hw)

    vmem_need = tile_rows * 128 * (2 * (c * itemsize + 4) + 4) + (1 << 20)
    vmem_limit = int(min(max(vmem_need + vmem_need // 2, 32 << 20), limit_cap))

    kernel = functools.partial(_focal_kernel, gamma=gamma, c=c,
                               tile_rows=tile_rows, total_pix=hw,
                               mask_tail=mask_tail)

    partials = pl.pallas_call(
        kernel,
        out_shape=jax.ShapeDtypeStruct((n, n_outer, 1, 1), jnp.float32),
        grid_spec=pltpu.PrefetchScalarGridSpec(
            num_scalar_prefetch=0,
            grid=(n, n_outer, n_inner),
            in_specs=[
                pl.BlockSpec((1, c, tile_rows, 128),
                             lambda b, so, si: (b, 0, so * n_inner + si, 0)),
                pl.BlockSpec((1, tile_rows, 128),
                             lambda b, so, si: (b, so * n_inner + si, 0)),
            ],
            out_specs=pl.BlockSpec((1, 1, 1, 1),
                                   lambda b, so, si: (b, so, 0, 0)),
            scratch_shapes=[pltpu.VMEM((tile_rows, 128), jnp.float32)],
        ),
        compiler_params=pltpu.CompilerParams(
            dimension_semantics=("parallel", "parallel", "arbitrary"),
            vmem_limit_bytes=vmem_limit),
    )(x4, t3)
    return jnp.sum(partials)


# ----------------------------------------------------------------------------
# Secondary kernel: (M, C) rows, classes on the lane axis (no HBM transpose).
# ----------------------------------------------------------------------------
def _focal_rows_kernel(x_ref, t_ref, out_ref, *, gamma, total_rows, tile_rows,
                       mask_tail):
    s = pl.program_id(0)
    x = x_ref[...].astype(jnp.float32)              # (tile_rows, C)
    t = t_ref[...]                                  # (tile_rows, 1) int32

    m = jnp.max(x, axis=-1, keepdims=True)
    z = x - m
    ez = jnp.exp(z)
    sum_exp = jnp.sum(ez, axis=-1, keepdims=True)
    cls = jax.lax.broadcasted_iota(jnp.int32, z.shape, 1)
    hit = cls == t
    z_t = jnp.sum(jnp.where(hit, z, 0.0), axis=-1, keepdims=True)
    logpt = z_t - jnp.log(sum_exp)
    if float(gamma) != 0.0:
        ez_t = jnp.sum(jnp.where(hit, ez, 0.0), axis=-1, keepdims=True)
        pt = ez_t * pl.reciprocal(sum_exp)
    else:
        pt = None
    loss = _loss_from_logpt(logpt, pt, gamma)       # (tile_rows, 1)

    if mask_tail:
        row = jax.lax.broadcasted_iota(jnp.int32, loss.shape, 0) + s * tile_rows
        loss = jnp.where(row < total_rows, loss, 0.0)
    out_ref[0] = jnp.sum(loss, keepdims=True)


def _focal_sum_rows(x2, t1, gamma):
    m_rows, c = x2.shape
    itemsize = jnp.dtype(x2.dtype).itemsize
    t2 = t1.reshape(m_rows, 1)

    row_bytes = 2 * (c * itemsize + 4) + 4
    tile_rows = max(8, min(1024, ((8 << 20) // max(row_bytes, 1)) // 8 * 8))
    if m_rows <= tile_rows:
        tile_rows = m_rows
    num_blocks = pl.cdiv(m_rows, tile_rows)
    mask_tail = (num_blocks * tile_rows != m_rows)

    kernel = functools.partial(_focal_rows_kernel, gamma=gamma,
                               total_rows=m_rows, tile_rows=tile_rows,
                               mask_tail=mask_tail)
    partials = pl.pallas_call(
        kernel,
        out_shape=jax.ShapeDtypeStruct((num_blocks, 1, 1), jnp.float32),
        grid_spec=pltpu.PrefetchScalarGridSpec(
            num_scalar_prefetch=0,
            grid=(num_blocks,),
            in_specs=[
                pl.BlockSpec((tile_rows, c), lambda s: (s, 0)),
                pl.BlockSpec((tile_rows, 1), lambda s: (s, 0)),
            ],
            out_specs=pl.BlockSpec((1, 1, 1), lambda s: (s, 0, 0)),
        ),
        compiler_params=pltpu.CompilerParams(
            dimension_semantics=("parallel",)),
    )(x2, t2)
    return jnp.sum(partials)


# ----------------------------------------------------------------------------
# Public wrapper (matches FocalLoss.forward semantics).
# ----------------------------------------------------------------------------
def focal_loss(x, target, gamma=0, size_average=True):
    """x: logits (N, C, H, W) / (N, C, ...) or (M, C). target: int labels."""
    if x.ndim > 2:
        n, c = x.shape[0], x.shape[1]
        hw = 1
        for d in x.shape[2:]:
            hw *= int(d)
        x3 = x.reshape(n, c, hw)                    # free view, no transpose
        t2 = target.reshape(n, hw).astype(jnp.int32)
        total = _focal_sum_nchw(x3, t2, gamma)
        denom = n * hw
    else:
        m_rows = x.shape[0]
        total = _focal_sum_rows(x, target.reshape(m_rows).astype(jnp.int32),
                                gamma)
        denom = m_rows
    if size_average:
        return total / jnp.float32(denom)
    return total


def _focal_loss_ref(x, target, gamma=0, size_average=True):
    if x.ndim > 2:
        n, c = x.shape[0], x.shape[1]
        x = jnp.transpose(x.reshape(n, c, -1), (0, 2, 1)).reshape(-1, c)
    t = target.reshape(-1)
    logp = jax.nn.log_softmax(x, axis=-1)
    logpt = jnp.take_along_axis(logp, t[:, None], axis=1)[:, 0]
    pt = jnp.exp(logpt)
    loss = -((1.0 - pt) ** gamma) * logpt
    return jnp.mean(loss) if size_average else jnp.sum(loss)


if __name__ == "__main__":
    key = jax.random.PRNGKey(0)
    kx, kt, kx2, kt2, kx3, kt3 = jax.random.split(key, 6)

    # Main NCHW path, integer gamma (squared-weight path).
    N, C, H, W = 2, 4, 16, 16
    x = jax.random.normal(kx, (N, C, H, W), dtype=jnp.float32)
    t = jax.random.randint(kt, (N, H, W), 0, C, dtype=jnp.int32)
    out = jax.block_until_ready(focal_loss(x, t, gamma=2.0, size_average=True))
    ref = _focal_loss_ref(x, t, gamma=2.0, size_average=True)
    assert np.allclose(np.asarray(out), np.asarray(ref), rtol=1e-5, atol=1e-5), (out, ref)

    # gamma = 0, sum reduction.
    out = jax.block_until_ready(focal_loss(x, t, gamma=0, size_average=False))
    ref = _focal_loss_ref(x, t, gamma=0, size_average=False)
    assert np.allclose(np.asarray(out), np.asarray(ref), rtol=1e-5, atol=1e-5), (out, ref)

    # Ragged spatial size (H*W % 128 != 0) + non-integer gamma (clamped power).
    xr = jax.random.normal(kx2, (1, 3, 15, 15), dtype=jnp.float32)
    tr = jax.random.randint(kt2, (1, 15, 15), 0, 3, dtype=jnp.int32)
    out = jax.block_until_ready(focal_loss(xr, tr, gamma=1.5, size_average=True))
    ref = _focal_loss_ref(xr, tr, gamma=1.5, size_average=True)
    assert np.allclose(np.asarray(out), np.asarray(ref), rtol=1e-5, atol=1e-5), (out, ref)

    # Secondary (M, C) path (classes on lanes, no HBM transpose).
    xm = jax.random.normal(kx3, (64, 10), dtype=jnp.float32)
    tm = jax.random.randint(kt3, (64,), 0, 10, dtype=jnp.int32)
    out = jax.block_until_ready(focal_loss(xm, tm, gamma=2, size_average=True))
    ref = _focal_loss_ref(xm, tm, gamma=2, size_average=True)
    assert np.allclose(np.asarray(out), np.asarray(ref), rtol=1e-5, atol=1e-5), (out, ref)

    print("KERNEL_OK")
</pallas_src>

<mosaic_0001>
module attributes {stable_mosaic.version = 11 : i64} {
  func.func @_focal_kernel(%arg0: i32, %arg1: i32, %arg2: i32, %arg3: memref<1x4x2x128xf32, #tpu.memory_space<vmem>>, %arg4: memref<1x2x128xi32, #tpu.memory_space<vmem>>, %arg5: memref<1x1x1x1xf32, #tpu.memory_space<vmem>>, %arg6: memref<2x128xf32, #tpu.memory_space<vmem>>) attributes {dimension_semantics = [#tpu.dimension_semantics<parallel>, #tpu.dimension_semantics<parallel>, #tpu.dimension_semantics<arbitrary>], iteration_bounds = array<i64: 2, 1, 1>, scalar_prefetch = 0 : i64, scratch_operands = 1 : i64, tpu.core_type = #tpu.core_type<tc>, window_params = [{transform_indices = @transform_0, window_bounds = array<i64: 1, 4, 2, 128>}, {transform_indices = @transform_1, window_bounds = array<i64: 1, 2, 128>}, {transform_indices = @transform_2, window_bounds = array<i64: 1, 1, 1, 1>}]} {
    %c0_i32 = arith.constant 0 : i32
    %0 = arith.cmpi eq, %arg2, %c0_i32 : i32
    %1 = arith.extui %0 : i1 to i32
    %c0_i32_0 = arith.constant 0 : i32
    %2 = arith.cmpi ne, %1, %c0_i32_0 : i32
    scf.if %2 {
      %cst_43 = arith.constant 0.000000e+00 : f32
      %71 = vector.broadcast %cst_43 : f32 to vector<2x128xf32>
      %c0_44 = arith.constant 0 : index
      %c0_45 = arith.constant 0 : index
      %72 = vector.load %arg6[%c0_44, %c0_45] : memref<2x128xf32, #tpu.memory_space<vmem>>, vector<2x128xf32>
      tpu.vector_store %arg6[%c0_44, %c0_45], %71 {strides = array<i32>} : memref<2x128xf32, #tpu.memory_space<vmem>>, vector<2x128xf32>,
    } else {
    }
    %c0 = arith.constant 0 : index
    %c0_1 = arith.constant 0 : index
    %c0_2 = arith.constant 0 : index
    %3 = vector.load %arg4[%c0, %c0_1, %c0_2] : memref<1x2x128xi32, #tpu.memory_space<vmem>>, vector<1x2x128xi32>
    %4 = vector.shape_cast %3 : vector<1x2x128xi32> to vector<2x128xi32>
    %c0_3 = arith.constant 0 : index
    %c0_4 = arith.constant 0 : index
    %c0_5 = arith.constant 0 : index
    %c0_6 = arith.constant 0 : index
    %5 = vector.load %arg3[%c0_3, %c0_4, %c0_5, %c0_6] : memref<1x4x2x128xf32, #tpu.memory_space<vmem>>, vector<1x1x2x128xf32>
    %6 = vector.shape_cast %5 : vector<1x1x2x128xf32> to vector<2x128xf32>
    %c0_7 = arith.constant 0 : index
    %c1 = arith.constant 1 : index
    %c0_8 = arith.constant 0 : index
    %c0_9 = arith.constant 0 : index
    %7 = vector.load %arg3[%c0_7, %c1, %c0_8, %c0_9] : memref<1x4x2x128xf32, #tpu.memory_space<vmem>>, vector<1x1x2x128xf32>
    %8 = vector.shape_cast %7 : vector<1x1x2x128xf32> to vector<2x128xf32>
    %9 = arith.maximumf %6, %8 : vector<2x128xf32>
    %c0_10 = arith.constant 0 : index
    %c2 = arith.constant 2 : index
    %c0_11 = arith.constant 0 : index
    %c0_12 = arith.constant 0 : index
    %10 = vector.load %arg3[%c0_10, %c2, %c0_11, %c0_12] : memref<1x4x2x128xf32, #tpu.memory_space<vmem>>, vector<1x1x2x128xf32>
    %11 = vector.shape_cast %10 : vector<1x1x2x128xf32> to vector<2x128xf32>
    %12 = arith.maximumf %9, %11 : vector<2x128xf32>
    %c0_13 = arith.constant 0 : index
    %c3 = arith.constant 3 : index
    %c0_14 = arith.constant 0 : index
    %c0_15 = arith.constant 0 : index
    %13 = vector.load %arg3[%c0_13, %c3, %c0_14, %c0_15] : memref<1x4x2x128xf32, #tpu.memory_space<vmem>>, vector<1x1x2x128xf32>
    %14 = vector.shape_cast %13 : vector<1x1x2x128xf32> to vector<2x128xf32>
    %15 = arith.maximumf %12, %14 : vector<2x128xf32>
    %c0_16 = arith.constant 0 : index
    %c0_17 = arith.constant 0 : index
    %c0_18 = arith.constant 0 : index
    %c0_19 = arith.constant 0 : index
    %16 = vector.load %arg3[%c0_16, %c0_17, %c0_18, %c0_19] : memref<1x4x2x128xf32, #tpu.memory_space<vmem>>, vector<1x1x2x128xf32>
    %17 = vector.shape_cast %16 : vector<1x1x2x128xf32> to vector<2x128xf32>
    %18 = arith.subf %17, %15 : vector<2x128xf32>
    %19 = math.exp %18 : vector<2x128xf32>
    %c0_i32_20 = arith.constant 0 : i32
    %20 = vector.broadcast %c0_i32_20 : i32 to vector<2x128xi32>
    %21 = arith.cmpi eq, %4, %20 : vector<2x128xi32>
    %cst = arith.constant 0.000000e+00 : f32
    %22 = vector.broadcast %cst : f32 to vector<2x128xf32>
    %23 = arith.select %21, %18, %22 : vector<2x128xi1>, vector<2x128xf32>
    %cst_21 = arith.constant 0.000000e+00 : f32
    %24 = vector.broadcast %cst_21 : f32 to vector<2x128xf32>
    %25 = arith.select %21, %19, %24 : vector<2x128xi1>, vector<2x128xf32>
    %c0_22 = arith.constant 0 : index
    %c1_23 = arith.constant 1 : index
    %c0_24 = arith.constant 0 : index
    %c0_25 = arith.constant 0 : index
    %26 = vector.load %arg3[%c0_22, %c1_23, %c0_24, %c0_25] : memref<1x4x2x128xf32, #tpu.memory_space<vmem>>, vector<1x1x2x128xf32>
    %27 = vector.shape_cast %26 : vector<1x1x2x128xf32> to vector<2x128xf32>
    %28 = arith.subf %27, %15 : vector<2x128xf32>
    %29 = math.exp %28 : vector<2x128xf32>
    %30 = arith.addf %19, %29 : vector<2x128xf32>
    %c1_i32 = arith.constant 1 : i32
    %31 = vector.broadcast %c1_i32 : i32 to vector<2x128xi32>
    %32 = arith.cmpi eq, %4, %31 : vector<2x128xi32>
    %33 = arith.select %32, %28, %23 : vector<2x128xi1>, vector<2x128xf32>
    %34 = arith.select %32, %29, %25 : vector<2x128xi1>, vector<2x128xf32>
    %c0_26 = arith.constant 0 : index
    %c2_27 = arith.constant 2 : index
    %c0_28 = arith.constant 0 : index
    %c0_29 = arith.constant 0 : index
    %35 = vector.load %arg3[%c0_26, %c2_27, %c0_28, %c0_29] : memref<1x4x2x128xf32, #tpu.memory_space<vmem>>, vector<1x1x2x128xf32>
    %36 = vector.shape_cast %35 : vector<1x1x2x128xf32> to vector<2x128xf32>
    %37 = arith.subf %36, %15 : vector<2x128xf32>
    %38 = math.exp %37 : vector<2x128xf32>
    %39 = arith.addf %30, %38 : vector<2x128xf32>
    %c2_i32 = arith.constant 2 : i32
    %40 = vector.broadcast %c2_i32 : i32 to vector<2x128xi32>
    %41 = arith.cmpi eq, %4, %40 : vector<2x128xi32>
    %42 = arith.select %41, %37, %33 : vector<2x128xi1>, vector<2x128xf32>
    %43 = arith.select %41, %38, %34 : vector<2x128xi1>, vector<2x128xf32>
    %c0_30 = arith.constant 0 : index
    %c3_31 = arith.constant 3 : index
    %c0_32 = arith.constant 0 : index
    %c0_33 = arith.constant 0 : index
    %44 = vector.load %arg3[%c0_30, %c3_31, %c0_32, %c0_33] : memref<1x4x2x128xf32, #tpu.memory_space<vmem>>, vector<1x1x2x128xf32>
    %45 = vector.shape_cast %44 : vector<1x1x2x128xf32> to vector<2x128xf32>
    %46 = arith.subf %45, %15 : vector<2x128xf32>
    %47 = math.exp %46 : vector<2x128xf32>
    %48 = arith.addf %39, %47 : vector<2x128xf32>
    %c3_i32 = arith.constant 3 : i32
    %49 = vector.broadcast %c3_i32 : i32 to vector<2x128xi32>
    %50 = arith.cmpi eq, %4, %49 : vector<2x128xi32>
    %51 = arith.select %50, %46, %42 : vector<2x128xi1>, vector<2x128xf32>
    %52 = arith.select %50, %47, %43 : vector<2x128xi1>, vector<2x128xf32>
    %53 = math.log %48 : vector<2x128xf32>
    %54 = arith.subf %51, %53 : vector<2x128xf32>
    %55 = tpu.reciprocal %48 : vector<2x128xf32> -> vector<2x128xf32>
    %56 = arith.mulf %52, %55 : vector<2x128xf32>
    %cst_34 = arith.constant 1.000000e+00 : f32
    %57 = vector.broadcast %cst_34 : f32 to vector<2x128xf32>
    %58 = arith.subf %57, %56 : vector<2x128xf32>
    %cst_35 = arith.constant 0.000000e+00 : f32
    %59 = vector.broadcast %cst_35 : f32 to vector<2x128xf32>
    %60 = arith.maximumf %58, %59 : vector<2x128xf32>
    %61 = arith.mulf %60, %60 : vector<2x128xf32>
    %cst_36 = arith.constant 0.000000e+00 : f32
    %62 = vector.broadcast %cst_36 : f32 to vector<2x128xf32>
    %63 = arith.subf %62, %61 : vector<2x128xf32>
    %64 = arith.mulf %63, %54 : vector<2x128xf32>
    %c0_37 = arith.constant 0 : index
    %c0_38 = arith.constant 0 : index
    %65 = vector.load %arg6[%c0_37, %c0_38] : memref<2x128xf32, #tpu.memory_space<vmem>>, vector<2x128xf32>
    %66 = arith.addf %65, %64 : vector<2x128xf32>
    %c0_39 = arith.constant 0 : index
    %c0_40 = arith.constant 0 : index
    %67 = vector.load %arg6[%c0_39, %c0_40] : memref<2x128xf32, #tpu.memory_space<vmem>>, vector<2x128xf32>
    tpu.vector_store %arg6[%c0_39, %c0_40], %66 {strides = array<i32>} : memref<2x128xf32, #tpu.memory_space<vmem>>, vector<2x128xf32>,
    %c0_i32_41 = arith.constant 0 : i32
    %68 = arith.cmpi eq, %arg2, %c0_i32_41 : i32
    %69 = arith.extui %68 : i1 to i32
    %c0_i32_42 = arith.constant 0 : i32
    %70 = arith.cmpi ne, %69, %c0_i32_42 : i32
    scf.if %70 {
      %c0_43 = arith.constant 0 : index
      %c0_44 = arith.constant 0 : index
      %71 = vector.load %arg6[%c0_43, %c0_44] : memref<2x128xf32, #tpu.memory_space<vmem>>, vector<2x128xf32>
      %72 = vector.shape_cast %71 : vector<2x128xf32> to vector<1x2x128xf32>
      %cst_45 = arith.constant dense<0.000000e+00> : vector<1xf32>
      %73 = vector.multi_reduction <add>, %72, %cst_45 [1, 2] : vector<1x2x128xf32> to vector<1xf32>
      %74 = vector.shape_cast %73 : vector<1xf32> to vector<1x1x1xf32>
      %75 = vector.extract %74[0, 0, 0] : f32 from vector<1x1x1xf32>
      %76 = vector.broadcast %75 : f32 to vector<1x1xf32>
      %77 = vector.shape_cast %76 : vector<1x1xf32> to vector<1x1x1x1xf32>
      %c0_46 = arith.constant 0 : index
      %c0_47 = arith.constant 0 : index
      %c0_48 = arith.constant 0 : index
      %c0_49 = arith.constant 0 : index
      %78 = vector.load %arg5[%c0_46, %c0_47, %c0_48, %c0_49] : memref<1x1x1x1xf32, #tpu.memory_space<vmem>>, vector<1x1x1x1xf32>
      tpu.vector_store %arg5[%c0_46, %c0_47, %c0_48, %c0_49], %77 {strides = array<i32>} : memref<1x1x1x1xf32, #tpu.memory_space<vmem>>, vector<1x1x1x1xf32>,
    } else {
    }
    return
  }
  func.func @transform_0(%arg0: i32, %arg1: i32, %arg2: i32) -> (i32, i32, i32, i32) {
    %c1_i32 = arith.constant 1 : i32
    %0 = arith.muli %arg1, %c1_i32 : i32
    %1 = arith.addi %0, %arg2 : i32
    %c0_i32 = arith.constant 0 : i32
    %c0_i32_0 = arith.constant 0 : i32
    %c0_i32_1 = arith.constant 0 : i32
    return %arg0, %c0_i32, %1, %c0_i32_0 : i32, i32, i32, i32
  }
  func.func @transform_1(%arg0: i32, %arg1: i32, %arg2: i32) -> (i32, i32, i32) {
    %c1_i32 = arith.constant 1 : i32
    %0 = arith.muli %arg1, %c1_i32 : i32
    %1 = arith.addi %0, %arg2 : i32
    %c0_i32 = arith.constant 0 : i32
    %c0_i32_0 = arith.constant 0 : i32
    return %arg0, %1, %c0_i32 : i32, i32, i32
  }
  func.func @transform_2(%arg0: i32, %arg1: i32, %arg2: i32) -> (i32, i32, i32, i32) {
    %c0_i32 = arith.constant 0 : i32
    %c0_i32_0 = arith.constant 0 : i32
    %c0_i32_1 = arith.constant 0 : i32
    return %arg0, %arg1, %c0_i32, %c0_i32_0 : i32, i32, i32, i32
  }
}

</mosaic_0001>

<bundles_post_ra>
// kernel: tpu_custom_call.1
= control target key start
LH: loop header
LB: loop body
LE: loop exit
PB: predicated region body
PF: predicated region fallthrough
CT: control target
= control target key end

     0   :  { %7 = vsyncpa [#allocation4], 0  ;;  %s815_s0 = inlined_call_operand.hbm [shape: f32[2,4,2,128], index: 0, kind: input, shape index: {}]   ;;  %s816_s1 = inlined_call_operand.hbm [shape: s32[2,2,128], index: 1, kind: input, shape index: {}]   ;;  %s817_s2 = inlined_call_operand.vmem [shape: f32[2,1,1,1], index: 2, kind: output, shape index: {}]  }
   0x1   :  { %9 = vsyncpa [#allocation4 + $0x1], 0 }
   0x2   :  { %10 = vsyncpa [#allocation6], 0 }
   0x3   :  { %12 = vsyncpa [#allocation6 + $0x1], 0  ;;  %s651_s9 = smov 0   ;;  %s653_s10 = smov 0  }
   0x4   :  { %s655_s11 = smov 0   ;;  %s657_s12 = smov 0  }
   0x5   :  { %s659_s13 = smov 0   ;;  %s661_s14 = smov 0  }
   0x6 LB: > { %s420_s15 = sadd.s32 4294967295, %s629_s14   ;;  %s37_s16 = sadd.s32 1, %s625_s13  ;;  %s629_s14 = sphi %s661_s14, %s18_s14   ;;  %s625_s13 = sphi %s659_s13, %s829_s13   ;;  %s621_s12 = sphi %s657_s12, %s828_s12   ;;  %s617_s11 = sphi %s655_s11, %s827_s11   ;;  %s613_s10 = sphi %s653_s10, %s826_s10   ;;  %s609_s9 = sphi %s651_s9, %s825_s9  }
   0x7   : > { %p39_p0 = scmp.ge.s32.totalorder %s37_s16, 2  ;;  %s48_s17 = sadd.s32 1, %s617_s11 }
   0x8   : > { %p55_p1 = scmp.ne.s32.totalorder %s617_s11, %s613_s10  ;;  %p56_p2 = scmp.eq.s32.totalorder %s629_s14, 0 }
   0x9   : > { %s831_s16 = smov (%p39_p0, %s37_s16), 0  ;;  %p61_p4 = scmp.ne.s32.totalorder %s613_s10, %s609_s9 }
   0xa   : > { %p687_p3 = por %p56_p2, %p55_p1  ;;  %s43_s19 = ssub.s32 %s625_s13, %s831_s16 }
   0xb   : > { %p62_p5 = scmp.eq.s32.totalorder %s420_s15, 0  ;;  %p46_p6 = scmp.eq.s32.totalorder %s43_s19, 0 }
   0xc   : > { %p451_p8 = scmp.lt.s32.totalorder %s629_s14, 2  ;;  %s703_s22 = sand.u32 1, %s617_s11  }
   0xd   : > { %p694_p7 = por %p62_p5, %p61_p4  ;;  %s437_s23 = sshll.u32 %s625_s13, 7 }
   0xe   : > { %s700_s21 = scalar_select %p46_p6, %s617_s11, %s48_s17  }
   0xf   : > { %s820_s20 = scalar_select %p694_p7, 1, 0 }
  0x10   : > { %s424_s24 = sshll.u32 %s703_s22, 3  ;;  %s710_s27 = scalar_lea.hbm %s815_s0, %s437_s23 }
  0x11   : > { %s147_s28 = scalar_lea.vmem [#allocation3], %s424_s24  ;;  %p714_p9 = pnand %p451_p8, %p687_p3 }
  0x12   : > { %s156_s29 = sshll.u32 %s147_s28, 4  ;;  %s144_s3 = scalar_lea.sflag [#allocation4], %s703_s22  ;;  %s718_s29 = int_to_ptr.vmem [resolvable:$true] %s156_s29 }
  0x13   : > { %s515_s4 = scalar_lea.hbm %s710_s27, 128  ;;  %p517_p11 = pneg %p714_p9 }
  0x14   : > { %p516_p10 = scmp.ne.s32.totalorder %s710_s27, %s515_s4  ;;  %s520_s7 = scalar_lea.hbm %s815_s0, 256 }
  0x15   : > { %p521_p0 = scmp.lt.u32.totalorder %s710_s27, %s815_s0  ;;  %p522_p1 = scmp.lt.u32.totalorder %s520_s7, %s515_s4 }
  0x16   : > { %p518_p12 = pnand %p517_p11, %p516_p10  ;;  %p524_p3 = scmp.lt.u32.totalorder %s515_s4, %s710_s27 }
  0x17   : > { %p523_p2 = por %p522_p1, %p521_p0 }
  0x18   : > { %p519_p13 = pneg %p518_p12 }
  0x19   : > { %p525_p4 = por %p524_p3, %p523_p2 }
  0x1b   : > { %p526_p5 = pnand %p525_p4, %p519_p13 }
  0x1d   : > { %529 = shalt.err (!%p526_p5)
}
  0x1e   : > { %s530_s15 = scalar_lea.vmem %s718_s29, 128  ;;  %s631_s17 = smov [#allocation3]  }
  0x1f   : > { %p531_p6 = scmp.ne.s32.totalorder %s718_s29, %s530_s15  ;;  %s535_s18 = sshll.u32 %s631_s17, 4  ;;  %s536_s18 = int_to_ptr.vmem [resolvable:$false] %s535_s18 }
  0x20   : > { %s537_s19 = scalar_lea.vmem %s536_s18, 256  ;;  %p538_p12 = scmp.lt.s32.totalorder %s718_s29, %s536_s18 }
  0x21   : > { %p533_p8 = pnand %p531_p6, %p517_p11  ;;  %p539_p0 = scmp.lt.s32.totalorder %s537_s19, %s530_s15 }
  0x23   : > { %p534_p10 = pneg %p533_p8  ;;  %p540_p1 = por %p539_p0, %p538_p12 }
  0x25   : > { %p541_p2 = pnand %p540_p1, %p534_p10 }
  0x27   : > { %544 = shalt.err (!%p541_p2)
}
  0x28   : > { %s632_s23 = smov 32   ;;  %s633_s24 = smov 2  }
  0x29   : > { %447 = dma.hbm_to_vmem [thread:$0]  (!%p714_p9), %s710_s27, 128, %s718_s29, %s144_s3, %s632_s23, %s632_s23, %s633_s24  }
  0x2a   : > { %p429_p13 = scmp.ge.s32.totalorder %s629_s14, 1  ;;  %p184_p3 = scmp.lt.s32.totalorder %s629_s14, 3 }
  0x2b   : > { %s427_s25 = sshll.u32 %s703_s22, 1  ;;  %s428_s28 = sshll.u32 %s625_s13, 5 }
  0x2c   : > { %p751_p4 = pnand %p429_p13, %p184_p3  ;;  %s170_s4 = scalar_lea.vmem [#allocation5], %s427_s25 }
  0x2d   : > { %s179_s5 = sshll.u32 %s170_s4, 4  ;;  %s759_s8 = scalar_lea.hbm %s816_s1, %s428_s28  ;;  %s180_s5 = int_to_ptr.vmem [resolvable:$true] %s179_s5 }
  0x2e   : > { %s822_s26 = scalar_select %p751_p4, 1, 0 }
  0x2f   : > { %s167_s27 = scalar_lea.sflag [#allocation6], %s703_s22  ;;  %s545_s29 = scalar_lea.hbm %s759_s8, 32 }
  0x30   : > { %p546_p5 = scmp.ne.s32.totalorder %s759_s8, %s545_s29  ;;  %s550_s15 = scalar_lea.hbm %s816_s1, 64 }
  0x31   : > { %p551_p10 = scmp.lt.u32.totalorder %s759_s8, %s816_s1  ;;  %p552_p12 = scmp.lt.u32.totalorder %s550_s15, %s545_s29 }
  0x32   : > { %p548_p6 = pnand %p546_p5, %p517_p11  ;;  %p554_p1 = scmp.lt.u32.totalorder %s545_s29, %s759_s8 }
  0x33   : > { %p553_p0 = por %p552_p12, %p551_p10 }
  0x34   : > { %p549_p8 = pneg %p548_p6 }
  0x35   : > { %p555_p2 = por %p554_p1, %p553_p0 }
  0x37   : > { %p556_p13 = pnand %p555_p2, %p549_p8 }
  0x39   : > { %559 = shalt.err (!%p556_p13)
}
  0x3a   : > { %s560_s22 = scalar_lea.vmem %s180_s5, 32  ;;  %s634_s19 = smov [#allocation5]  }
  0x3b   : > { %p561_p3 = scmp.ne.s32.totalorder %s180_s5, %s560_s22  ;;  %s565_s23 = sshll.u32 %s634_s19, 4  ;;  %s566_s23 = int_to_ptr.vmem [resolvable:$false] %s565_s23 }
  0x3c   : > { %s567_s24 = scalar_lea.vmem %s566_s23, 64  ;;  %p568_p7 = scmp.lt.s32.totalorder %s180_s5, %s566_s23 }
  0x3d   : > { %p563_p5 = pnand %p561_p3, %p517_p11  ;;  %p569_p4 = scmp.lt.s32.totalorder %s567_s24, %s560_s22 }
  0x3f   : > { %p564_p6 = pneg %p563_p5  ;;  %p570_p10 = por %p569_p4, %p568_p7 }
  0x41   : > { %p571_p12 = pnand %p570_p10, %p564_p6 }
  0x43   : > { %574 = shalt.err (!%p571_p12)
}
  0x44   : > { %450 = dma.hbm_to_vmem [thread:$0]  (!%p714_p9), %s759_s8, 32, %s180_s5, %s167_s27  }
  0x45   : > { %p823_p8 = scmp.ne.s32.totalorder %s822_s26, 0 }
  0x46   : > { %s190_s25 = sand.u32 (!%p823_p8), 1, %s613_s10   ;;  %p824_p11 = scmp.ne.s32.totalorder (!%p823_p8), %s820_s20, 0 }
  0x47   : > { %188 = sbr.rel (%p823_p8) target bundleno = 352 (0x160), region = 28  ;;  %s430_s28 = sshll.u32 (!%p823_p8), %s190_s25, 3 }
  0x48   : > { %s191_s4 = scalar_lea.sflag (!%p823_p8), [#allocation4], %s190_s25  ;;  %s194_s6 = scalar_lea.vmem (!%p823_p8), [#allocation3], %s430_s28 }
  0x4e   : > { %600 = dma.done.wait (%p824_p11), %s191_s4, 128  }
  0x4f   : > { %602 = vsyncadd (%p824_p11), %s191_s4, 4294967168  ;;  %s431_s7 = sshll.u32 %s190_s25, 1  ;;  %s200_s29 = scalar_lea.sflag [#allocation6], %s190_s25 }
  0x50   : > { %s203_s30 = scalar_lea.vmem [#allocation5], %s431_s7 }
  0x51   : > { %604 = dma.done.wait (%p824_p11), %s200_s29, 32  }
  0x52   : > { %606 = vsyncadd (%p824_p11), %s200_s29, 4294967264  ;;  %v635_v0 = vmov 0.0   ;;  %v244_v1 = vld [vmem:[%s194_s6] sm:$0x3]  ;;  %v432_v2 = vld [vmem:[%s194_s6 + $0x2] sm:$0x3] }
  0x53   : > { %242 = vst [vmem:[#allocation2] sm:$0x3] %v635_v0  ;;  %v247_v3 = vmax.f32 %v244_v1, %v432_v2  ;;  %v433_v4 = vld [vmem:[%s194_s6 + $0x4] sm:$0x3]  ;;  %v434_v5 = vld [vmem:[%s194_s6 + $0x6] sm:$0x3] }
  0x54   : > { %v243_v19 = vld [vmem:[%s203_s30] sm:$0x3]  ;;  %vm298_vm4 = vcmask 1041408   ;;  %p232_p7 = scmp.lt.s32.totalorder %s621_s12, 1  ;;  %vm310_vm5 = vcmask 0  }
  0x55   : > { %v250_v6 = vmax.f32 %v247_v3, %v433_v4  ;;  %vm257_vm0 = vcmp.eq.s32.totalorder %v243_v19, 0  ;;  %vm264_vm1 = vcmp.eq.s32.totalorder %v243_v19, 1  ;;  %vm271_vm2 = vcmp.eq.s32.totalorder %v243_v19, 2 }
  0x56   : > { %vm278_vm3 = vcmp.eq.s32.totalorder %v243_v19, 3  ;;  %s833_s12 = smov (!%p232_p7, %s621_s12), 1 }
  0x57   : > { %v253_v7 = vmax.f32 %v250_v6, %v434_v5  ;;  %s237_s5 = scalar_lea.vmem %s817_s2, %s833_s12 }
  0x59   : > { %v254_v8 = vsub.f32 %v244_v1, %v253_v7  ;;  %v260_v9 = vsub.f32 %v432_v2, %v253_v7  ;;  %v267_v10 = vsub.f32 %v433_v4, %v253_v7  ;;  %v274_v11 = vsub.f32 %v434_v5, %v253_v7 }
  0x5a   : > { %v291_v41 = vld [vmem:[#allocation2] sm:$0x3] }
  0x5b   : > { %v255_v12 = vmul.f32 1.442695, %v254_v8  ;;  %v261_v13 = vmul.f32 1.442695, %v260_v9  ;;  %v268_v14 = vmul.f32 1.442695, %v267_v10 }
  0x5c   : > { %v275_v15 = vmul.f32 1.442695, %v274_v11  ;;  %v258_v26 = vsel %vm257_vm0, %v254_v8, 0.0 }
  0x5d   : > { %503 = vpow2.f32 %v255_v12  ;;  %v265_v28 = vsel %vm264_vm1, %v260_v9, %v258_v26 }
  0x5e   : > { %505 = vpow2.f32 %v261_v13  ;;  %v272_v32 = vsel %vm271_vm2, %v267_v10, %v265_v28 }
  0x5f   : > { %507 = vpow2.f32 %v268_v14  ;;  %v279_v36 = vsel %vm278_vm3, %v274_v11, %v272_v32 }
  0x60   : > { %509 = vpow2.f32 %v275_v15 }
  0x67   : > { %v504_v16 = vpop.eup %503 }
  0x68   : > { %v506_v17 = vpop.eup %505  ;;  %v259_v24 = vsel %vm257_vm0, %v504_v16, 0.0 }
  0x69   : > { %v508_v18 = vpop.eup %507  ;;  %v263_v20 = vadd.f32 %v506_v17, %v504_v16  ;;  %v266_v25 = vsel %vm264_vm1, %v506_v17, %v259_v24 }
  0x6a   : > { %v510_v21 = vpop.eup %509  ;;  %v273_v27 = vsel %vm271_vm2, %v508_v18, %v266_v25 }
  0x6b   : > { %v270_v22 = vadd.f32 %v508_v18, %v263_v20  ;;  %v280_v29 = vsel %vm278_vm3, %v510_v21, %v273_v27 }
  0x6d   : > { %v277_v23 = vadd.f32 %v510_v21, %v270_v22 }
  0x6f   : > { %511 = vlog2.f32 %v277_v23 }
  0x70   : > { %513 = vrcp.f32 %v277_v23 }
  0x79   : > { %v512_v30 = vpop.eup %511 }
  0x7a   : > { %v514_v31 = vpop.eup %513  ;;  %v282_v34 = vmul.f32 0.6931472, %v512_v30 }
  0x7b   : > { %v285_v33 = vmul.f32 %v514_v31, %v280_v29 }
  0x7c   : > { %v283_v38 = vsub.f32 %v279_v36, %v282_v34 }
  0x7d   : > { %v286_v35 = vsub.f32 1.0, %v285_v33 }
  0x7f   : > { %v287_v37 = vmax.f32 %v286_v35, 0.0 }
  0x81   : > { %v288_v39 = vmul.f32 %v287_v37, %v287_v37 }
  0x83   : > { %v289_v40 = vsub.f32 0.0, %v288_v39 }
  0x85   : > { %v290_v42 = vmul.f32 %v289_v40, %v283_v38 }
  0x87   : > { %v292_v43 = vadd.f32 %v291_v41, %v290_v42 }
  0x89   : > { %293 = vst [vmem:[#allocation2] sm:$0x3] %v292_v43 }
  0x90   : > { %v297_v44 = vld [vmem:[#allocation2] sm:$0x3] }
  0x91   : > { %v299_v45 = vsel %vm298_vm4, %v297_v44, 0.0 }
  0x92   : > { %300 = vadd.xlane.f32.xlu0 %v299_v45 }
 0x11f   : > { %v301_v46 = vpop.xlane.xlu0 %300 }
 0x120   : > { %v302_v47 = vrot.slane %v301_v46, 4 }
 0x122   : > { %v303_v48 = vadd.f32 %v302_v47, %v301_v46 }
 0x124   : > { %v304_v49 = vrot.slane %v303_v48, 2 }
 0x126   : > { %v305_v50 = vadd.f32 %v304_v49, %v303_v48 }
 0x128   : > { %v306_v51 = vrot.slane %v305_v50, 1 }
 0x12a   : > { %v307_v52 = vadd.f32 %v306_v51, %v305_v50 }
 0x12c   : > { %438 = vpush %v307_v52 }
 0x15d   : > { %s439_s8 = spop %438 }
 0x15e   : > { %v309_v53 = vstv %s439_s8 }
 0x15f   : > { %311 = vst.msk [vmem:[%s237_s5] sm:$0x1] %vm310_vm5, %v309_v53 }
 0x160 PF: > { %s18_s14 = sadd.s32 1, %s629_s14   ;;  %s825_s9 = smov %s613_s10 }
 0x161   : > { %p15_p9 = scmp.ge.s32.totalorder %s18_s14, 4   ;;  %s826_s10 = smov %s617_s11 }
 0x162   : > { %s827_s11 = smov %s700_s21  ;;  %s828_s12 = smov %s625_s13 }
 0x163   : > { %s829_s13 = smov %s831_s16  ;;  %17 = sbr.rel (!%p15_p9) target bundleno = 6 (0x6), region = 92 }
 0x16a   :  { %335 = vsyncpa [#allocation4], 1 }
 0x16b   :  { %337 = vsyncpa [#allocation4 + $0x1], 1 }
 0x16c   :  { %338 = vsyncpa [#allocation6], 1 }
 0x16d   :  { %340 = vsyncpa [#allocation6 + $0x1], 1 }

</bundles_post_ra>
